<compile_context>
chip_gen: v7x
topology: tpu7x:2x2x1
jax: 0.10.0
libtpu: 0.0.40
codegen_flags: <defaults>
</compile_context>

<pallas_src>
import functools

import jax
import jax.numpy as jnp
from jax.experimental import pallas as pl
from jax.experimental.pallas import tpu as pltpu

# ---- constants mirroring the PyTorch module -----------------------------
ALPHA = 0.7                      # mixed-loss weight (Train.__init__ arg `alpha`)
SLICE_LO, SLICE_HI = 100, 700    # evaluate(): y[:, :, 100:700]
SMOOTH_L1_BETA = 1.0             # torch.nn.SmoothL1Loss default

_TILE_BYTE_BUDGET = 2 * 1024 * 1024   # per-input f32 tile working-set target


def _mixed_loss_partials_kernel(yp_ref, yt_ref, out_ref, *, alpha, slice_lo, slice_hi):
    """Per-tile partial reductions.

    yp_ref, yt_ref : (TR, T) tiles in the inputs' native dtype (bf16/f32), VMEM
    out_ref        : (1, 8, 128) f32 partial slab for this grid step:
                       lane 0 -> mixed-loss partial (alpha*sse + (1-alpha)*sl1)
                       lane 1 -> sum |d| over the [slice_lo, slice_hi) window
                       lane 2 -> max |d| over the window  (>= 0)
    """
    # Upcast in-vreg right after the load (before the subtraction) so the
    # accumulation math matches the f32 PyTorch reference on all chips (v5e
    # has no bf16 VPU path).
    yp = yp_ref[...].astype(jnp.float32)
    yt = yt_ref[...].astype(jnp.float32)

    d = yp - yt
    ad = jnp.abs(d)
    dd = d * d                                     # shared by MSE and SmoothL1

    # MSE (reduction='sum') and SmoothL1 (beta=1, reduction='sum') partials.
    sse = jnp.sum(dd)
    sl1 = jnp.sum(jnp.where(ad < SMOOTH_L1_BETA, 0.5 * dd, ad - 0.5))
    mixed = alpha * sse + (1.0 - alpha) * sl1      # linear -> partials sum correctly

    # Window mask from a T-only iota (broadcast over rows), one select shared
    # by both windowed statistics.  0-fill is safe for the max: |d| >= 0 and
    # the window is non-empty within every tile (T is not tiled).
    t = yp_ref.shape[-1]
    t_idx = jax.lax.broadcasted_iota(jnp.int32, (1, t), 1)
    in_win = (t_idx >= slice_lo) & (t_idx < slice_hi)
    ad_w = jnp.where(in_win, ad, 0.0)
    sum_abs = jnp.sum(ad_w)
    max_abs = jnp.max(ad_w)

    # Scatter the three scalars into a lane-indexed (1, 8, 128) slab.
    lane = jax.lax.broadcasted_iota(jnp.int32, (1, 8, 128), 2)
    vec = jnp.where(lane == 0, mixed, 0.0)
    vec = jnp.where(lane == 1, sum_abs, vec)
    vec = jnp.where(lane == 2, max_abs, vec)
    out_ref[...] = vec


def _pick_row_tile(rows: int, t: int, max_rows_per_tile=None) -> int:
    """Largest multiple-of-8 row count whose f32 tile stays under the budget."""
    max_rows = max(8, (_TILE_BYTE_BUDGET // (t * 4)) // 8 * 8)
    if max_rows_per_tile is not None:
        max_rows = max(8, min(max_rows, (max_rows_per_tile // 8) * 8))
    if rows <= max_rows:
        return rows          # single block == full dim, no (8,128) constraint
    return max_rows


def train_step_metrics(y_pred, y_true, *, alpha=ALPHA, max_rows_per_tile=None):
    """Returns (mixed_loss, mean_diff, max_diff) exactly as `Train` computes them.

    Accepts the model's native dtype (bf16 or f32); no wrapper-side upcast.
    """
    assert y_pred.shape == y_true.shape and y_pred.ndim == 3
    B, C, T = y_pred.shape
    assert T >= SLICE_HI, "time axis must cover the 100:700 evaluation window"

    rows = B * C
    yp2 = y_pred.reshape(rows, T)
    yt2 = y_true.reshape(rows, T)

    tr = _pick_row_tile(rows, T, max_rows_per_tile)
    pad = (-rows) % tr
    if pad:
        # Zero rows contribute 0 to every partial (|d| = 0, max fill 0 <= true max).
        yp2 = jnp.pad(yp2, ((0, pad), (0, 0)))
        yt2 = jnp.pad(yt2, ((0, pad), (0, 0)))
    num_tiles = (rows + pad) // tr

    kernel = functools.partial(
        _mixed_loss_partials_kernel,
        alpha=float(alpha),
        slice_lo=SLICE_LO,
        slice_hi=SLICE_HI,
    )

    partials = pl.pallas_call(
        kernel,
        out_shape=jax.ShapeDtypeStruct((num_tiles, 8, 128), jnp.float32),
        grid=(num_tiles,),
        in_specs=[
            pl.BlockSpec((tr, T), lambda i: (i, 0)),
            pl.BlockSpec((tr, T), lambda i: (i, 0)),
        ],
        out_specs=pl.BlockSpec((1, 8, 128), lambda i: (i, 0, 0)),
        compiler_params=pltpu.CompilerParams(
            dimension_semantics=("parallel",),      # both TCs stream on v7x
        ),
    )(yp2, yt2)

    # Tiny final reduction over per-tile partials (num_tiles scalars each).
    mixed_loss = jnp.sum(partials[:, 0, 0])
    sum_abs = jnp.sum(partials[:, 0, 1])
    max_diff = jnp.max(partials[:, 0, 2])

    n_window = B * C * (SLICE_HI - SLICE_LO)
    mean_diff = sum_abs / jnp.float32(n_window)
    return mixed_loss, mean_diff, max_diff


def _reference(y_pred, y_true, alpha=ALPHA):
    y_pred = y_pred.astype(jnp.float32)
    y_true = y_true.astype(jnp.float32)
    d = y_pred - y_true
    ad = jnp.abs(d)
    sse = jnp.sum(d * d)
    sl1 = jnp.sum(jnp.where(ad < SMOOTH_L1_BETA, 0.5 * d * d, ad - 0.5))
    mixed = alpha * sse + (1.0 - alpha) * sl1
    w = ad[:, :, SLICE_LO:SLICE_HI]
    return mixed, jnp.mean(w), jnp.max(w)


def _check(got, ref, rtol=1e-5, atol=1e-4):
    g_loss, g_mean, g_max = got
    r_loss, r_mean, r_max = ref
    assert jnp.allclose(g_loss, r_loss, rtol=rtol, atol=atol), (g_loss, r_loss)
    assert jnp.allclose(g_mean, r_mean, rtol=rtol, atol=1e-6), (g_mean, r_mean)
    assert jnp.allclose(g_max, r_max, rtol=rtol, atol=1e-6), (g_max, r_max)


if __name__ == "__main__":
    # Small deterministic inputs: batch=2, sensors=16, time=768 (>= 700 so the
    # evaluate() slice [:, :, 100:700] is well defined).
    key = jax.random.PRNGKey(0)
    k1, k2 = jax.random.split(key)
    B, C, T = 2, 16, 768
    y_true = jax.random.normal(k1, (B, C, T), dtype=jnp.float32)            # y_batch
    y_pred = y_true + 0.1 * jax.random.normal(k2, (B, C, T), jnp.float32)   # model output (synthetic)

    # 1) f32 inputs, single-tile path.
    out = train_step_metrics(y_pred, y_true)
    jax.block_until_ready(out)
    _check(out, _reference(y_pred, y_true))

    # 2) Force a multi-tile grid (row tile = 8 -> grid of 4) to exercise the
    #    tiled / "parallel" partial-reduction path and the padding logic.
    out_tiled = train_step_metrics(y_pred, y_true, max_rows_per_tile=8)
    jax.block_until_ready(out_tiled)
    _check(out_tiled, _reference(y_pred, y_true))

    # 3) Native bf16 inputs (no wrapper cast); kernel upcasts in-vreg, so it
    #    matches an f32 reference computed on the same bf16-quantized values.
    yp_bf16 = y_pred.astype(jnp.bfloat16)
    yt_bf16 = y_true.astype(jnp.bfloat16)
    out_bf16 = train_step_metrics(yp_bf16, yt_bf16)
    jax.block_until_ready(out_bf16)
    _check(out_bf16, _reference(yp_bf16, yt_bf16))

    print("KERNEL_OK")
</pallas_src>

<mosaic_0001>
module attributes {stable_mosaic.version = 11 : i64} {
  func.func @_mixed_loss_partials_kernel(%arg0: i32, %arg1: memref<32x768xf32, #tpu.memory_space<vmem>>, %arg2: memref<32x768xf32, #tpu.memory_space<vmem>>, %arg3: memref<1x8x128xf32, #tpu.memory_space<vmem>>) attributes {dimension_semantics = [#tpu.dimension_semantics<parallel>], iteration_bounds = array<i64: 1>, scalar_prefetch = 0 : i64, scratch_operands = 0 : i64, tpu.core_type = #tpu.core_type<tc>, window_params = [{transform_indices = @transform_0, window_bounds = array<i64: 32, 768>}, {transform_indices = @transform_1, window_bounds = array<i64: 32, 768>}, {transform_indices = @transform_2, window_bounds = array<i64: 1, 8, 128>}]} {
    %c0 = arith.constant 0 : index
    %c0_0 = arith.constant 0 : index
    %0 = vector.load %arg1[%c0, %c0_0] : memref<32x768xf32, #tpu.memory_space<vmem>>, vector<32x768xf32>
    %c0_1 = arith.constant 0 : index
    %c0_2 = arith.constant 0 : index
    %1 = vector.load %arg2[%c0_1, %c0_2] : memref<32x768xf32, #tpu.memory_space<vmem>>, vector<32x768xf32>
    %2 = arith.subf %0, %1 : vector<32x768xf32>
    %3 = math.absf %2 : vector<32x768xf32>
    %4 = arith.mulf %2, %2 : vector<32x768xf32>
    %5 = vector.shape_cast %4 : vector<32x768xf32> to vector<1x32x768xf32>
    %cst = arith.constant dense<0.000000e+00> : vector<1xf32>
    %6 = vector.multi_reduction <add>, %5, %cst [1, 2] : vector<1x32x768xf32> to vector<1xf32>
    %7 = vector.shape_cast %6 : vector<1xf32> to vector<1x1x1xf32>
    %8 = vector.extract %7[0, 0, 0] : f32 from vector<1x1x1xf32>
    %cst_3 = arith.constant 1.000000e+00 : f32
    %9 = vector.broadcast %cst_3 : f32 to vector<32x768xf32>
    %10 = arith.cmpf olt, %3, %9 : vector<32x768xf32>
    %cst_4 = arith.constant 5.000000e-01 : f32
    %11 = vector.broadcast %cst_4 : f32 to vector<32x768xf32>
    %12 = arith.mulf %11, %4 : vector<32x768xf32>
    %cst_5 = arith.constant 5.000000e-01 : f32
    %13 = vector.broadcast %cst_5 : f32 to vector<32x768xf32>
    %14 = arith.subf %3, %13 : vector<32x768xf32>
    %15 = arith.select %10, %12, %14 : vector<32x768xi1>, vector<32x768xf32>
    %16 = vector.shape_cast %15 : vector<32x768xf32> to vector<1x32x768xf32>
    %cst_6 = arith.constant dense<0.000000e+00> : vector<1xf32>
    %17 = vector.multi_reduction <add>, %16, %cst_6 [1, 2] : vector<1x32x768xf32> to vector<1xf32>
    %18 = vector.shape_cast %17 : vector<1xf32> to vector<1x1x1xf32>
    %19 = vector.extract %18[0, 0, 0] : f32 from vector<1x1x1xf32>
    %cst_7 = arith.constant 0.699999988 : f32
    %20 = arith.mulf %cst_7, %8 : f32
    %cst_8 = arith.constant 3.000000e-01 : f32
    %21 = arith.mulf %cst_8, %19 : f32
    %22 = arith.addf %20, %21 : f32
    %23 = tpu.iota {dimensions = array<i32: 1>} : vector<1x768xi32>
    %c100_i32 = arith.constant 100 : i32
    %24 = vector.broadcast %c100_i32 : i32 to vector<1x768xi32>
    %25 = arith.cmpi sge, %23, %24 : vector<1x768xi32>
    %c700_i32 = arith.constant 700 : i32
    %26 = vector.broadcast %c700_i32 : i32 to vector<1x768xi32>
    %27 = arith.cmpi slt, %23, %26 : vector<1x768xi32>
    %28 = arith.andi %25, %27 : vector<1x768xi1>
    %cst_9 = arith.constant 0.000000e+00 : f32
    %29 = vector.shape_cast %28 : vector<1x768xi1> to vector<1x768xi1>
    %30 = vector.broadcast %29 : vector<1x768xi1> to vector<32x768xi1>
    %31 = vector.broadcast %cst_9 : f32 to vector<32x768xf32>
    %32 = arith.select %30, %3, %31 : vector<32x768xi1>, vector<32x768xf32>
    %33 = vector.shape_cast %32 : vector<32x768xf32> to vector<1x32x768xf32>
    %cst_10 = arith.constant dense<0.000000e+00> : vector<1xf32>
    %34 = vector.multi_reduction <add>, %33, %cst_10 [1, 2] : vector<1x32x768xf32> to vector<1xf32>
    %35 = vector.shape_cast %34 : vector<1xf32> to vector<1x1x1xf32>
    %36 = vector.extract %35[0, 0, 0] : f32 from vector<1x1x1xf32>
    %37 = vector.shape_cast %32 : vector<32x768xf32> to vector<1x32x768xf32>
    %cst_11 = arith.constant dense<0xFF800000> : vector<1xf32>
    %38 = vector.multi_reduction <maximumf>, %37, %cst_11 [1, 2] : vector<1x32x768xf32> to vector<1xf32>
    %39 = vector.shape_cast %38 : vector<1xf32> to vector<1x1x1xf32>
    %40 = vector.extract %39[0, 0, 0] : f32 from vector<1x1x1xf32>
    %41 = tpu.iota {dimensions = array<i32: 2>} : vector<1x8x128xi32>
    %c0_i32 = arith.constant 0 : i32
    %42 = vector.broadcast %c0_i32 : i32 to vector<1x8x128xi32>
    %43 = arith.cmpi eq, %41, %42 : vector<1x8x128xi32>
    %cst_12 = arith.constant 0.000000e+00 : f32
    %44 = vector.broadcast %22 : f32 to vector<1x8x128xf32>
    %45 = vector.broadcast %cst_12 : f32 to vector<1x8x128xf32>
    %46 = arith.select %43, %44, %45 : vector<1x8x128xi1>, vector<1x8x128xf32>
    %c1_i32 = arith.constant 1 : i32
    %47 = vector.broadcast %c1_i32 : i32 to vector<1x8x128xi32>
    %48 = arith.cmpi eq, %41, %47 : vector<1x8x128xi32>
    %49 = vector.broadcast %36 : f32 to vector<1x8x128xf32>
    %50 = arith.select %48, %49, %46 : vector<1x8x128xi1>, vector<1x8x128xf32>
    %c2_i32 = arith.constant 2 : i32
    %51 = vector.broadcast %c2_i32 : i32 to vector<1x8x128xi32>
    %52 = arith.cmpi eq, %41, %51 : vector<1x8x128xi32>
    %53 = vector.broadcast %40 : f32 to vector<1x8x128xf32>
    %54 = arith.select %52, %53, %50 : vector<1x8x128xi1>, vector<1x8x128xf32>
    %c0_13 = arith.constant 0 : index
    %c0_14 = arith.constant 0 : index
    %c0_15 = arith.constant 0 : index
    %55 = vector.load %arg3[%c0_13, %c0_14, %c0_15] : memref<1x8x128xf32, #tpu.memory_space<vmem>>, vector<1x8x128xf32>
    tpu.vector_store %arg3[%c0_13, %c0_14, %c0_15], %54 {strides = array<i32>} : memref<1x8x128xf32, #tpu.memory_space<vmem>>, vector<1x8x128xf32>,
    return
  }
  func.func @transform_0(%arg0: i32) -> (i32, i32) {
    %c0_i32 = arith.constant 0 : i32
    %c0_i32_0 = arith.constant 0 : i32
    return %arg0, %c0_i32 : i32, i32
  }
  func.func @transform_1(%arg0: i32) -> (i32, i32) {
    %c0_i32 = arith.constant 0 : i32
    %c0_i32_0 = arith.constant 0 : i32
    return %arg0, %c0_i32 : i32, i32
  }
  func.func @transform_2(%arg0: i32) -> (i32, i32, i32) {
    %c0_i32 = arith.constant 0 : i32
    %c0_i32_0 = arith.constant 0 : i32
    %c0_i32_1 = arith.constant 0 : i32
    return %arg0, %c0_i32, %c0_i32_0 : i32, i32, i32
  }
}

</mosaic_0001>

<bundles_post_ra>
// kernel: tpu_custom_call.1
= control target key start
LH: loop header
LB: loop body
LE: loop exit
PB: predicated region body
PF: predicated region fallthrough
CT: control target
= control target key end

     0   :  { %7 = vsyncpa [#allocation3], 0  ;;  %s955_s0 = inlined_call_operand.hbm [shape: f32[32,768], index: 0, kind: input, shape index: {}]   ;;  %s956_s1 = inlined_call_operand.hbm [shape: f32[32,768], index: 1, kind: input, shape index: {}]   ;;  %s957_s2 = inlined_call_operand.hbm [shape: f32[1,8,128], index: 2, kind: output, shape index: {}]  }
   0x1   :  { %8 = vsyncpa [#allocation6], 0 }
   0x2   :  { %9 = vsyncpa [#allocation4], 0  ;;  %s583_s9 = smov [#allocation2]   ;;  %s511_s13 = scalar_lea.hbm %s955_s0, 3072 }
   0x3   :  { %s15_s10 = sshll.u32 %s583_s9, 4  ;;  %p512_p0 = scmp.ne.s32.totalorder %s955_s0, %s511_s13  ;;  %s16_s10 = int_to_ptr.vmem [resolvable:$true] %s15_s10 }
   0x4   :  { %p515_p1 = scmp.lt.u32.totalorder %s511_s13, %s955_s0 }
   0x6   :  { %p517_p2 = pnand %p515_p1, %p512_p0 }
   0x8   :  { %520 = shalt.err (!%p517_p2)
}
   0x9   :  { %s521_s18 = scalar_lea.vmem %s16_s10, 3072  ;;  %p526_p4 = scmp.lt.s32.totalorder %s16_s10, %s16_s10 }
   0xa   :  { %p522_p3 = scmp.ne.s32.totalorder %s16_s10, %s521_s18  ;;  %p527_p5 = scmp.lt.s32.totalorder %s521_s18, %s521_s18 }
   0xc   :  { %p528_p6 = por %p527_p5, %p526_p4 }
   0xe   :  { %p529_p7 = pnand %p528_p6, %p522_p3 }
  0x10   :  { %532 = shalt.err (!%p529_p7)
}
  0x11   :  { %s584_s19 = smov 768   ;;  %s585_s20 = smov 48  }
  0x12   :  { %21 = dma.hbm_to_vmem [thread:$0]  %s955_s0, 3072, %s16_s10, [#allocation3], %s584_s19, %s584_s19, %s585_s20  }
  0x13   :  { %s586_s23 = smov [#allocation5]   ;;  %s533_s27 = scalar_lea.hbm %s956_s1, 3072 }
  0x14   :  { %s27_s24 = sshll.u32 %s586_s23, 4  ;;  %p534_p8 = scmp.ne.s32.totalorder %s956_s1, %s533_s27  ;;  %s28_s24 = int_to_ptr.vmem [resolvable:$true] %s27_s24 }
  0x15   :  { %p537_p9 = scmp.lt.u32.totalorder %s533_s27, %s956_s1 }
  0x17   :  { %p539_p10 = pnand %p537_p9, %p534_p8 }
  0x19   :  { %542 = shalt.err (!%p539_p10)
}
  0x1a   :  { %s543_s4 = scalar_lea.vmem %s28_s24, 3072  ;;  %p548_p12 = scmp.lt.s32.totalorder %s28_s24, %s28_s24 }
  0x1b   :  { %p544_p11 = scmp.ne.s32.totalorder %s28_s24, %s543_s4  ;;  %p549_p13 = scmp.lt.s32.totalorder %s543_s4, %s543_s4 }
  0x1d   :  { %p550_p0 = por %p549_p13, %p548_p12 }
  0x1f   :  { %p551_p1 = pnand %p550_p0, %p544_p11 }
  0x21   :  { %554 = shalt.err (!%p551_p1)
}
  0x22   :  { %33 = dma.hbm_to_vmem [thread:$0]  %s956_s1, 3072, %s28_s24, [#allocation6], %s584_s19, %s584_s19, %s585_s20  }
  0x23   :  { %577 = dma.done.wait [#allocation3], 3072  }
  0x24   :  { %578 = vsyncadd [#allocation3], 4294964224 }
  0x25   :  { %579 = dma.done.wait [#allocation6], 3072  }
  0x26   :  { %580 = vsyncadd [#allocation6], 4294964224  ;;  %v40_v0 = vld [vmem:[#allocation2] sm:$0xff]  ;;  %v41_v1 = vld [vmem:[#allocation2 + $0x8] sm:$0xff]  ;;  %s587_s12 = smov [#allocation7]  }
  0x27   :  { %v64_v2 = vld [vmem:[#allocation5] sm:$0xff]  ;;  %v65_v3 = vld [vmem:[#allocation5 + $0x8] sm:$0xff]  ;;  %v42_v4 = vld [vmem:[#allocation2 + $0x10] sm:$0xff]  ;;  %s464_s13 = sshll.u32 %s587_s12, 4  ;;  %s465_s13 = int_to_ptr.vmem [resolvable:$true] %s464_s13 }
  0x28   :  { %v60_v5 = vld [vmem:[#allocation2 + $0xa0] sm:$0xff]  ;;  %v61_v6 = vld [vmem:[#allocation2 + $0xa8] sm:$0xff]  ;;  %v62_v7 = vld [vmem:[#allocation2 + $0xb0] sm:$0xff]  ;;  %v627_v11 = vsub.f32 %v40_v0, %v64_v2  ;;  %v89_v12 = vsub.f32 %v41_v1, %v65_v3  ;;  %s555_s14 = scalar_lea.vmem %s465_s13, 128  ;;  %p560_p3 = scmp.lt.s32.totalorder %s465_s13, %s465_s13 }
  0x29   :  { %v66_v8 = vld [vmem:[#allocation5 + $0x10] sm:$0xff]  ;;  %v43_v9 = vld [vmem:[#allocation2 + $0x18] sm:$0xff]  ;;  %v84_v10 = vld [vmem:[#allocation5 + $0xa0] sm:$0xff]  ;;  %p556_p2 = scmp.ne.s32.totalorder %s465_s13, %s555_s14  ;;  %p561_p4 = scmp.lt.s32.totalorder %s555_s14, %s555_s14 }
  0x2a   :  { %v67_v13 = vld [vmem:[#allocation5 + $0x18] sm:$0xff]  ;;  %v85_v14 = vld [vmem:[#allocation5 + $0xa8] sm:$0xff]  ;;  %v86_v15 = vld [vmem:[#allocation5 + $0xb0] sm:$0xff]  ;;  %v629_v16 = vsub.f32 %v60_v5, %v84_v10  ;;  %v90_v17 = vsub.f32 %v42_v4, %v66_v8  ;;  %v645_v25 = vmul.f32 %v627_v11, %v627_v11  ;;  %v647_v26 = vmul.f32 %v89_v12, %v89_v12 }
  0x2b   :  { %v631_v18 = vsub.f32 %v61_v6, %v85_v14  ;;  %v633_v19 = vsub.f32 %v62_v7, %v86_v15  ;;  %v44_v20 = vld [vmem:[#allocation2 + $0x20] sm:$0xff]  ;;  %v638_v23 = vsub.f32 %v43_v9, %v67_v13  ;;  %v45_v27 = vld [vmem:[#allocation2 + $0x28] sm:$0xff]  ;;  %v46_v33 = vld [vmem:[#allocation2 + $0x30] sm:$0xff]  ;;  %v677_v49 = vand.u32 2147483647, %v89_v12  ;;  %p562_p5 = por %p561_p4, %p560_p3 }
  0x2c   :  { %v68_v21 = vld [vmem:[#allocation5 + $0x20] sm:$0xff]  ;;  %v636_v22 = vand.u32 2147483647, %v629_v16  ;;  %v69_v28 = vld [vmem:[#allocation5 + $0x28] sm:$0xff]  ;;  %v654_v32 = vmul.f32 %v90_v17, %v90_v17  ;;  %v70_v34 = vld [vmem:[#allocation5 + $0x30] sm:$0xff]  ;;  %v160_v37 = vadd.f32 %v647_v26, %v645_v25  ;;  %v323_v15 = vlaneseq }
  0x2d   :  { %v641_v24 = vand.u32 2147483647, %v631_v18  ;;  %v92_v29 = vsub.f32 %v44_v20, %v68_v21  ;;  %v652_v31 = vand.u32 2147483647, %v633_v19  ;;  %v656_v35 = vsub.f32 %v45_v27, %v69_v28  ;;  %v47_v38 = vld [vmem:[#allocation2 + $0x38] sm:$0xff]  ;;  %v48_v44 = vld [vmem:[#allocation2 + $0x40] sm:$0xff]  ;;  %p563_p6 = pnand %p562_p5, %p556_p2 }
  0x2e   :  { %v660_v36 = vmul.f32 %v638_v23, %v638_v23  ;;  %v71_v39 = vld [vmem:[#allocation5 + $0x38] sm:$0xff]  ;;  %v664_v40 = vsub.f32 %v46_v33, %v70_v34  ;;  %v161_v43 = vadd.f32 %v160_v37, %v654_v32  ;;  %v72_v45 = vld [vmem:[#allocation5 + $0x40] sm:$0xff]  ;;  %v49_v50 = vld [vmem:[#allocation2 + $0x48] sm:$0xff]  ;;  %v685_v58 = vand.u32 2147483647, %v90_v17 }
  0x2f   :  { %962 = vst [vmem:[#allocation11_spill] sm:$0xff] %v641_v24  ;;  %v417_v30 = vmax.f32 %v641_v24, %v636_v22  ;;  %963 = vst [vmem:[#allocation12_spill] sm:$0xff] %v652_v31  ;;  %v667_v42 = vmul.f32 %v92_v29, %v92_v29  ;;  %v670_v46 = vsub.f32 %v47_v38, %v71_v39  ;;  %v73_v51 = vld [vmem:[#allocation5 + $0x48] sm:$0xff]  ;;  %v50_v56 = vld [vmem:[#allocation2 + $0x50] sm:$0xff]  ;;  %v696_v6 = vand.u32 2147483647, %v92_v29 }
  0x30   :  { %v674_v47 = vmul.f32 %v656_v35, %v656_v35  ;;  %v162_v48 = vadd.f32 %v161_v43, %v660_v36  ;;  %v96_v52 = vsub.f32 %v48_v44, %v72_v45  ;;  %v681_v53 = vmul.f32 %v664_v40, %v664_v40  ;;  %v74_v57 = vld [vmem:[#allocation5 + $0x50] sm:$0xff]  ;;  %v51_v62 = vld [vmem:[#allocation2 + $0x58] sm:$0xff]  ;;  %v52_v4 = vld [vmem:[#allocation2 + $0x60] sm:$0xff] }
  0x31   :  { %v427_v41 = vmax.f32 %v652_v31, %v417_v30  ;;  %v97_v59 = vsub.f32 %v49_v50, %v73_v51  ;;  %v689_v60 = vmul.f32 %v670_v46, %v670_v46  ;;  %v75_v63 = vld [vmem:[#allocation5 + $0x58] sm:$0xff]  ;;  %v98_v1 = vsub.f32 %v50_v56, %v74_v57  ;;  %v76_v5 = vld [vmem:[#allocation5 + $0x60] sm:$0xff]  ;;  %v53_v10 = vld [vmem:[#allocation2 + $0x68] sm:$0xff] }
  0x32   :  { %v163_v54 = vadd.f32 %v162_v48, %v667_v42  ;;  %v693_v2 = vmul.f32 %v96_v52, %v96_v52  ;;  %v698_v7 = vsub.f32 %v51_v62, %v75_v63  ;;  %v54_v12 = vld [vmem:[#allocation2 + $0x70] sm:$0xff]  ;;  %v77_v13 = vld [vmem:[#allocation5 + $0x68] sm:$0xff]  ;;  %v55_v17 = vld [vmem:[#allocation2 + $0x78] sm:$0xff]  ;;  %v704_v27 = vsub.f32 %v52_v4, %v76_v5 }
  0x33   :  { %v431_v55 = vmax.f32 %v427_v41, %v677_v49  ;;  %v700_v8 = vmul.f32 %v97_v59, %v97_v59  ;;  %v56_v20 = vld [vmem:[#allocation2 + $0x80] sm:$0xff]  ;;  %v57_v21 = vld [vmem:[#allocation2 + $0x88] sm:$0xff]  ;;  %v706_v28 = vmul.f32 %v98_v1, %v98_v1  ;;  %v58_v30 = vld [vmem:[#allocation2 + $0x90] sm:$0xff]  ;;  %v709_v37 = vand.u32 2147483647, %v96_v52 }
  0x34   :  { %v164_v61 = vadd.f32 %v163_v54, %v674_v47  ;;  %v78_v33 = vld [vmem:[#allocation5 + $0x70] sm:$0xff]  ;;  %v79_v34 = vld [vmem:[#allocation5 + $0x78] sm:$0xff]  ;;  %v80_v38 = vld [vmem:[#allocation5 + $0x80] sm:$0xff]  ;;  %v101_v43 = vsub.f32 %v53_v10, %v77_v13  ;;  %v713_v44 = vmul.f32 %v698_v7, %v698_v7  ;;  %v717_v50 = vand.u32 127, %v323_v15 }
  0x35   :  { %v435_v0 = vmax.f32 %v431_v55, %v685_v58  ;;  %v81_v39 = vld [vmem:[#allocation5 + $0x88] sm:$0xff]  ;;  %v82_v41 = vld [vmem:[#allocation5 + $0x90] sm:$0xff]  ;;  %v59_v51 = vld [vmem:[#allocation2 + $0x98] sm:$0xff]  ;;  %v102_v55 = vsub.f32 %v54_v12, %v78_v33  ;;  %v103_v56 = vsub.f32 %v55_v17, %v79_v34  ;;  %v721_v52 = vmul.f32 %v704_v27, %v704_v27 }
  0x36   :  { %v165_v3 = vadd.f32 %v164_v61, %v681_v53  ;;  %v83_v54 = vld [vmem:[#allocation5 + $0x98] sm:$0xff]  ;;  %v104_v63 = vsub.f32 %v56_v20, %v80_v38  ;;  %v728_v4 = vand.u32 2147483647, %v97_v59  ;;  %v730_v5 = vmul.f32 %v101_v43, %v101_v43 }
  0x37   :  { %v416_v14 = vmax.f32 %v435_v0, %v696_v6  ;;  %v63_v61 = vld [vmem:[#allocation2 + $0xb8] sm:$0xff]  ;;  %v724_v0 = vsub.f32 %v57_v21, %v81_v39  ;;  %v733_v10 = vsub.f32 %v59_v51, %v83_v54  ;;  %v737_v13 = vadd.s32 640, %v717_v50 }
  0x38   :  { %v166_v9 = vadd.f32 %v165_v3, %v689_v60  ;;  %v87_v62 = vld [vmem:[#allocation5 + $0xb8] sm:$0xff]  ;;  %v726_v3 = vsub.f32 %v58_v30, %v82_v41  ;;  %vm330_vm0 = vcmp.ge.s32.totalorder %v717_v50, 100  ;;  %v742_v15 = vmul.f32 %v102_v55, %v102_v55 }
  0x39   :  { %v418_v48 = vmax.f32 %v709_v37, %v416_v14  ;;  %v740_v14 = vsub.f32 %v63_v61, %v87_v62  ;;  %v744_v17 = vmul.f32 %v103_v56, %v103_v56  ;;  %v747_v20 = vmul.f32 %v104_v63, %v104_v63 }
  0x3a   :  { %v167_v29 = vadd.f32 %v166_v9, %v693_v2  ;;  %v751_v21 = vmul.f32 %v724_v0, %v724_v0  ;;  %v757_v30 = vand.u32 2147483647, %v98_v1  ;;  %v761_v33 = vmul.f32 %v733_v10, %v733_v10 }
  0x3b   :  { %v420_v12 = vmax.f32 %v728_v4, %v418_v48  ;;  %v765_v34 = vmul.f32 %v629_v16, %v629_v16  ;;  %v769_v38 = vmul.f32 %v631_v18, %v631_v18  ;;  %v774_v41 = vmul.f32 %v633_v19, %v633_v19 }
  0x3c   :  { %v168_v45 = vadd.f32 %v167_v29, %v700_v8  ;;  %v755_v29 = vmul.f32 %v726_v3, %v726_v3  ;;  %v112_v1 = vand.u32 2147483647, %v627_v11  ;;  %v778_v48 = vand.u32 2147483647, %v101_v43 }
  0x3d   :  { %vm341_vm1 = vcmp.lt.s32.totalorder %v737_v13, 700  ;;  %v783_v51 = vand.u32 2147483647, %v638_v23  ;;  %v117_v18 = vand.u32 2147483647, %v656_v35  ;;  %v791_v19 = vmul.f32 %v740_v14, %v740_v14 }
  0x3e   :  { %v169_v57 = vadd.f32 %v168_v45, %v706_v28  ;;  %v421_v45 = vmax.f32 %v757_v30, %v420_v12  ;;  %v787_v54 = vand.u32 2147483647, %v664_v40  ;;  %v794_v11 = vand.u32 2147483647, %v670_v46 }
  0x3f   :  { %v796_v43 = vand.u32 2147483647, %v102_v55  ;;  %v801_v23 = vand.u32 2147483647, %v104_v63  ;;  %v217_v35 = vmul.f32 0.5, %v647_v26  ;;  %v475_v40 = vadd.f32 -0.5, %v677_v49 }
  0x40   :  { %v170_v9 = vadd.f32 %v169_v57, %v713_v44  ;;  %v798_v57 = vand.u32 2147483647, %v103_v56  ;;  %v422_v62 = vmax.f32 %v778_v48, %v421_v45  ;;  %vm193_vm2 = vcmp.lt.f32.partialorder %v677_v49, 1.0 }
  0x41   :  { %vm194_vm3 = vcmp.lt.f32.partialorder %v685_v58, 1.0  ;;  %v810_v46 = vsel %vm330_vm0, %v112_v1, 0.0  ;;  %v216_v56 = vmul.f32 0.5, %v645_v25  ;;  %v218_v63 = vmul.f32 0.5, %v654_v32 }
  0x42   :  { %v171_v59 = vadd.f32 %v170_v9, %v721_v52  ;;  %v476_v26 = vadd.f32 -0.5, %v685_v58  ;;  %vm195_vm4 = vcmp.lt.f32.partialorder %v783_v51, 1.0  ;;  %v219_v9 = vmul.f32 0.5, %v660_v36 }
  0x43   :  { %v477_v12 = vadd.f32 -0.5, %v783_v51  ;;  %v265_v45 = vsel %vm193_vm2, %v217_v35, %v475_v40  ;;  %vm192_vm5 = vcmp.lt.f32.partialorder %v112_v1, 1.0  ;;  %v424_v25 = vmax.f32 %v796_v43, %v422_v62 }
  0x44   :  { %v172_v39 = vadd.f32 %v171_v59, %v730_v5  ;;  %v384_v59 = vadd.f32 %v810_v46, %v677_v49  ;;  %vm196_vm6 = vcmp.lt.f32.partialorder %v696_v6, 1.0  ;;  %v220_v32 = vmul.f32 0.5, %v667_v42 }
  0x45   :  { %v478_v31 = vadd.f32 -0.5, %v696_v6  ;;  %v266_v49 = vsel %vm194_vm3, %v218_v63, %v476_v26  ;;  %vm197_vm7 = vcmp.lt.f32.partialorder %v117_v18, 1.0  ;;  %v221_v35 = vmul.f32 0.5, %v674_v47 }
  0x46   :  { %v173_v16 = vadd.f32 %v172_v39, %v742_v15  ;;  %v267_v42 = vsel %vm195_vm4, %v219_v9, %v477_v12  ;;  %v849_v9 = vsel %vm330_vm0, %v787_v54, 0.0  ;;  %v852_v12 = vand.u32 2147483647, %v733_v10 }
  0x47   :  { %vm198_vm8 = vcmp.lt.f32.partialorder %v787_v54, 1.0  ;;  %vm199_vm9 = vcmp.lt.f32.partialorder %v794_v11, 1.0  ;;  %vm200_vm10 = vcmp.lt.f32.partialorder %v709_v37, 1.0  ;;  %vm201_vm11 = vcmp.lt.f32.partialorder %v728_v4, 1.0 }
  0x48   :  { %v174_v61 = vadd.f32 %v173_v16, %v744_v17  ;;  %v474_v16 = vadd.f32 -0.5, %v112_v1  ;;  %vm202_vm12 = vcmp.lt.f32.partialorder %v757_v30, 1.0  ;;  %vm205_vm15 = vcmp.lt.f32.partialorder %v778_v48, 1.0 }
  0x49   :  { %vm206_vm2 = vcmp.lt.f32.partialorder %v796_v43, 1.0  ;;  %vm207_vm3 = vcmp.lt.f32.partialorder %v798_v57, 1.0  ;;  %vm208_vm4 = vcmp.lt.f32.partialorder %v801_v23, 1.0 }
  0x4a   :  { %v175_v55 = vadd.f32 %v174_v61, %v747_v20  ;;  %v385_v61 = vadd.f32 %v384_v59, %v685_v58  ;;  %v264_v24 = vsel %vm192_vm5, %v216_v56, %v474_v16  ;;  %v837_v59 = vsel %vm341_vm1, %v117_v18, 0.0 }
  0x4b   :  { %v288_v40 = vadd.f32 %v265_v45, %v264_v24  ;;  %v425_v58 = vmax.f32 %v798_v57, %v424_v25  ;;  %v222_v56 = vmul.f32 0.5, %v681_v53  ;;  %v480_v24 = vadd.f32 -0.5, %v787_v54 }
  0x4c   :  { %v176_v39 = vadd.f32 %v175_v55, %v751_v21  ;;  %v386_v1 = vadd.f32 %v385_v61, %v783_v51  ;;  %v479_v55 = vadd.f32 -0.5, %v117_v18  ;;  %v223_v25 = vmul.f32 0.5, %v689_v60 }
  0x4d   :  { %v289_v47 = vadd.f32 %v288_v40, %v266_v49  ;;  %v482_v49 = vadd.f32 -0.5, %v709_v37  ;;  %v123_v60 = vand.u32 2147483647, %v698_v7  ;;  %v124_v7 = vand.u32 2147483647, %v704_v27 }
  0x4e   :  { %v177_v36 = vadd.f32 %v176_v39, %v755_v29  ;;  %v387_v63 = vadd.f32 %v386_v1, %v696_v6  ;;  %v268_v39 = vsel %vm196_vm6, %v220_v32, %v478_v31  ;;  %v481_v6 = vadd.f32 -0.5, %v794_v11 }
  0x4f   :  { %v290_v45 = vadd.f32 %v289_v47, %v267_v42  ;;  %v269_v31 = vsel %vm197_vm7, %v221_v35, %v479_v55  ;;  %v426_v32 = vmax.f32 %v801_v23, %v425_v58  ;;  %v270_v1 = vsel %vm198_vm8, %v222_v56, %v480_v24 }
  0x50   :  { %v178_v62 = vadd.f32 %v177_v36, %v761_v33  ;;  %v388_v53 = vadd.f32 %v387_v63, %v837_v59  ;;  %v224_v36 = vmul.f32 0.5, %v693_v2  ;;  %v483_v55 = vadd.f32 -0.5, %v728_v4 }
  0x51   :  { %v291_v61 = vadd.f32 %v290_v45, %v268_v39  ;;  %v271_v42 = vsel %vm199_vm9, %v223_v25, %v481_v6  ;;  %v428_v58 = vmax.f32 %v852_v12, %v426_v32  ;;  %v226_v63 = vmul.f32 0.5, %v706_v28 }
  0x52   :  { %v179_v26 = vadd.f32 %v178_v62, %v765_v34  ;;  %v389_v10 = vadd.f32 %v388_v53, %v849_v9  ;;  %v225_v62 = vmul.f32 0.5, %v700_v8  ;;  %v484_v47 = vadd.f32 -0.5, %v757_v30 }
  0x53   :  { %v292_v35 = vadd.f32 %v291_v61, %v269_v31  ;;  %v227_v39 = vmul.f32 0.5, %v713_v44  ;;  %v485_v53 = vadd.f32 -0.5, %v123_v60  ;;  %vm203_vm13 = vcmp.lt.f32.partialorder %v123_v60, 1.0 }
  0x54   :  { %v180_v16 = vadd.f32 %v179_v26, %v769_v38  ;;  %v390_v18 = vadd.f32 %v389_v10, %v794_v11  ;;  %v272_v26 = vsel %vm200_vm10, %v224_v36, %v482_v49  ;;  %v273_v45 = vsel %vm201_vm11, %v225_v62, %v483_v55 }
  0x55   :  { %v293_v56 = vadd.f32 %v292_v35, %v270_v1  ;;  %v429_v27 = vmax.f32 %v810_v46, %v428_v58  ;;  %v228_v25 = vmul.f32 0.5, %v721_v52  ;;  %v486_v6 = vadd.f32 -0.5, %v124_v7 }
  0x56   :  { %v181_v54 = vadd.f32 %v180_v16, %v774_v41  ;;  %v391_v2 = vadd.f32 %v390_v18, %v709_v37  ;;  %v883_v37 = vsel %vm341_vm1, %v123_v60, 0.0  ;;  %v274_v31 = vsel %vm202_vm12, %v226_v63, %v484_v47 }
  0x57   :  { %v294_v24 = vadd.f32 %v293_v56, %v271_v42  ;;  %vm204_vm14 = vcmp.lt.f32.partialorder %v124_v7, 1.0  ;;  %v229_v10 = vmul.f32 0.5, %v730_v5  ;;  %v275_v61 = vsel %vm203_vm13, %v227_v39, %v485_v53 }
  0x58   :  { %v182_v40 = vadd.f32 %v181_v54, %v791_v19  ;;  %v392_v8 = vadd.f32 %v391_v2, %v728_v4  ;;  %v372_v4 = vsel %vm330_vm0, %v124_v7, 0.0  ;;  %v487_v54 = vadd.f32 -0.5, %v778_v48 }
  0x59   :  { %v295_v16 = vadd.f32 %v294_v24, %v272_v26  ;;  %v430_v46 = vmax.f32 %v837_v59, %v429_v27  ;;  %v230_v52 = vmul.f32 0.5, %v742_v15  ;;  %v276_v49 = vsel %vm204_vm14, %v228_v25, %v486_v6 }
  0x5a   :  { %183 = vadd.xlane.f32.xlu0 %v182_v40  ;;  %v393_v28 = vadd.f32 %v392_v8, %v757_v30  ;;  %v488_v1 = vadd.f32 -0.5, %v796_v43  ;;  %v231_v5 = vmul.f32 0.5, %v744_v17  ;;  %v129_v35 = vand.u32 2147483647, %v724_v0 }
  0x5b   :  { %v296_v32 = vadd.f32 %v295_v16, %v273_v45  ;;  %v489_v59 = vadd.f32 -0.5, %v798_v57  ;;  %v277_v40 = vsel %vm205_vm15, %v229_v10, %v487_v54  ;;  %v432_v62 = vmax.f32 %v849_v9, %v430_v46 }
  0x5c   :  { %v394_v44 = vadd.f32 %v393_v28, %v883_v37  ;;  %v232_v42 = vmul.f32 0.5, %v747_v20  ;;  %v490_v58 = vadd.f32 -0.5, %v801_v23  ;;  %v278_v2 = vsel %vm206_vm2, %v230_v52, %v488_v1 }
  0x5d   :  { %v297_v36 = vadd.f32 %v296_v32, %v274_v31  ;;  %v233_v56 = vmul.f32 0.5, %v751_v21  ;;  %v491_v9 = vadd.f32 -0.5, %v129_v35  ;;  %v279_v7 = vsel %vm207_vm3, %v231_v5, %v489_v59  ;;  %v964_v32 = vld [vmem:[#allocation11_spill] sm:$0xff] }
  0x5e   :  { %v395_v30 = vadd.f32 %v394_v44, %v372_v4  ;;  %v433_v63 = vmax.f32 %v372_v4, %v432_v62  ;;  %vm209_vm5 = vcmp.lt.f32.partialorder %v129_v35, 1.0  ;;  %v234_v47 = vmul.f32 0.5, %v755_v29 }
  0x5f   :  { %v298_v18 = vadd.f32 %v297_v36, %v275_v61  ;;  %v280_v8 = vsel %vm208_vm4, %v232_v42, %v490_v58  ;;  %v235_v39 = vmul.f32 0.5, %v761_v33  ;;  %v493_v53 = vadd.f32 -0.5, %v852_v12 }
  0x60   :  { %v396_v60 = vadd.f32 %v395_v30, %v778_v48  ;;  %v130_v48 = vand.u32 2147483647, %v726_v3  ;;  %v281_v45 = vsel %vm209_vm5, %v233_v56, %v491_v9  ;;  %vm211_vm7 = vcmp.lt.f32.partialorder %v852_v12, 1.0 }
  0x61   :  { %v299_v15 = vadd.f32 %v298_v18, %v276_v49  ;;  %v236_v29 = vmul.f32 0.5, %v765_v34  ;;  %v494_v16 = vadd.f32 -0.5, %v636_v22  ;;  %v237_v6 = vmul.f32 0.5, %v769_v38 }
  0x62   :  { %v397_v55 = vadd.f32 %v396_v60, %v796_v43  ;;  %v377_v43 = vsel %vm341_vm1, %v129_v35, 0.0  ;;  %v492_v26 = vadd.f32 -0.5, %v130_v48  ;;  %vm210_vm6 = vcmp.lt.f32.partialorder %v130_v48, 1.0 }
  0x63   :  { %v300_v0 = vadd.f32 %v299_v15, %v277_v40  ;;  %v434_v27 = vmax.f32 %v377_v43, %v433_v63  ;;  %v135_v4 = vand.u32 2147483647, %v740_v14  ;;  %v419_v44 = vmax.f32 %v783_v51, %v794_v11 }
  0x64   :  { %v398_v17 = vadd.f32 %v397_v55, %v798_v57  ;;  %v378_v57 = vsel %vm330_vm0, %v130_v48, 0.0  ;;  %v282_v25 = vsel %vm210_vm6, %v234_v47, %v492_v26  ;;  %vm212_vm0 = vcmp.lt.f32.partialorder %v636_v22, 1.0 }
  0x65   :  { %v301_v3 = vadd.f32 %v300_v0, %v278_v2  ;;  %v495_v10 = vadd.f32 -0.5, %v964_v32  ;;  %v283_v61 = vsel %vm211_vm7, %v235_v39, %v493_v53  ;;  %v436_v54 = vmax.f32 %v378_v57, %v434_v27 }
  0x66   :  { %v399_v20 = vadd.f32 %v398_v17, %v801_v23  ;;  %vm213_vm8 = vcmp.lt.f32.partialorder %v964_v32, 1.0  ;;  %v238_v38 = vmul.f32 0.5, %v774_v41  ;;  %v284_v36 = vsel %vm212_vm0, %v236_v29, %v494_v16 }
  0x67   :  { %v302_v21 = vadd.f32 %v301_v3, %v279_v7  ;;  %v239_v52 = vmul.f32 0.5, %v791_v19  ;;  %v383_v11 = vsel %vm341_vm1, %v135_v4, 0.0  ;;  %v497_v49 = vadd.f32 -0.5, %v135_v4 }
  0x68   :  { %v400_v24 = vadd.f32 %v399_v20, %v377_v43  ;;  %v285_v1 = vsel %vm213_vm8, %v237_v6, %v495_v10  ;;  %v437_v60 = vmax.f32 %v383_v11, %v436_v54  ;;  %vm215_vm10 = vcmp.lt.f32.partialorder %v135_v4, 1.0 }
  0x69   :  { %v303_v23 = vadd.f32 %v302_v21, %v280_v8  ;;  %v287_v59 = vsel %vm215_vm10, %v239_v52, %v497_v49  ;;  %vm448_vm1 = vcmp.eq.s32.totalorder %v717_v50, 0  ;;  %vm451_vm11 = vcmp.eq.s32.totalorder %v717_v50, 1 }
  0x6a   :  { %v401_v28 = vadd.f32 %v400_v24, %v378_v57  ;;  %vm454_vm12 = vcmp.eq.s32.totalorder %v717_v50, 2 }
  0x6b   :  { %v304_v33 = vadd.f32 %v303_v23, %v281_v45 }
  0x6c   :  { %v402_v31 = vadd.f32 %v401_v28, %v852_v12  ;;  %v965_v12 = vld [vmem:[#allocation12_spill] sm:$0xff] }
  0x6d   :  { %v305_v46 = vadd.f32 %v304_v33, %v282_v25  ;;  %v496_v30 = vadd.f32 -0.5, %v965_v12  ;;  %vm214_vm9 = vcmp.lt.f32.partialorder %v965_v12, 1.0 }
  0x6e   :  { %v403_v34 = vadd.f32 %v402_v31, %v636_v22  ;;  %v423_v22 = vmax.f32 %v419_v44, %v883_v37 }
  0x6f   :  { %v306_v51 = vadd.f32 %v305_v46, %v283_v61  ;;  %v286_v5 = vsel %vm214_vm9, %v238_v38, %v496_v30 }
  0x70   :  { %v404_v14 = vadd.f32 %v403_v34, %v964_v32  ;;  %v438_v40 = vmax.f32 %v423_v22, %v437_v60 }
  0x71   :  { %v307_v18 = vadd.f32 %v306_v51, %v284_v36 }
  0x72   :  { %v405_v41 = vadd.f32 %v404_v14, %v965_v12 }
  0x73   :  { %v308_v19 = vadd.f32 %v307_v18, %v285_v1 }
  0x74   :  { %v406_v35 = vadd.f32 %v405_v41, %v383_v11 }
  0x75   :  { %v309_v62 = vadd.f32 %v308_v19, %v286_v5 }
  0x76   :  { %407 = vadd.xlane.f32.xlu1 %v406_v35 }
  0x77   :  { %v310_v55 = vadd.f32 %v309_v62, %v287_v59 }
  0x79   :  { %311 = vadd.xlane.f32.xlu0 %v310_v55 }
  0x7a   :  { %439 = vmax.xlane.f32.xlu1 %v438_v40 }
  0xe7   :  { %v184_v13 = vpop.xlane.xlu0 %183 }
  0xe8   :  { %v185_v15 = vrot.slane %v184_v13, 4 }
  0xea   :  { %v186_v37 = vadd.f32 %v185_v15, %v184_v13 }
  0xec   :  { %v187_v42 = vrot.slane %v186_v37, 2 }
  0xee   :  { %v188_v48 = vadd.f32 %v187_v42, %v186_v37 }
  0xf0   :  { %v189_v58 = vrot.slane %v188_v48, 1 }
  0xf2   :  { %v190_v2 = vadd.f32 %v189_v58, %v188_v48 }
  0xf4   :  { %498 = vpush %v190_v2 }
 0x103   :  { %v408_v17 = vpop.xlane.xlu1 %407 }
 0x104   :  { %v409_v0 = vrot.slane %v408_v17, 4 }
 0x106   :  { %v410_v56 = vadd.f32 %v409_v0, %v408_v17  ;;  %v312_v9 = vpop.xlane.xlu0 %311 }
 0x107   :  { %v440_v43 = vpop.xlane.xlu1 %439  ;;  %v313_v63 = vrot.slane %v312_v9, 4 }
 0x108   :  { %v411_v7 = vrot.slane %v410_v56, 2  ;;  %v441_v20 = vrot.slane %v440_v43, 4 }
 0x109   :  { %v314_v3 = vadd.f32 %v313_v63, %v312_v9 }
 0x10a   :  { %v442_v47 = vmax.f32 %v440_v43, %v441_v20  ;;  %v412_v57 = vadd.f32 %v411_v7, %v410_v56 }
 0x10b   :  { %v315_v26 = vrot.slane %v314_v3, 2 }
 0x10c   :  { %v443_v8 = vrot.slane %v442_v47, 2  ;;  %v413_v39 = vrot.slane %v412_v57, 1 }
 0x10d   :  { %v316_v24 = vadd.f32 %v315_v26, %v314_v3 }
 0x10e   :  { %v444_v21 = vmax.f32 %v442_v47, %v443_v8  ;;  %v414_v23 = vadd.f32 %v413_v39, %v412_v57 }
 0x10f   :  { %v317_v53 = vrot.slane %v316_v24, 1 }
 0x110   :  { %v445_v45 = vrot.slane %v444_v21, 1 }
 0x111   :  { %v318_v27 = vadd.f32 %v317_v53, %v316_v24 }
 0x112   :  { %v446_v28 = vmax.f32 %v444_v21, %v445_v45 }
 0x113   :  { %500 = vpush %v318_v27 }
 0x114   :  { %502 = vpush %v414_v23 }
 0x115   :  { %504 = vpush %v446_v28 }
 0x125   :  { %s499_s1 = spop %498 }
 0x126   :  { %s320_s6 = smul.f32 0.7, %s499_s1 }
 0x144   :  { %s501_s7 = spop %500 }
 0x145   :  { %s321_s8 = smul.f32 0.3, %s501_s7  ;;  %s503_s9 = spop %502 }
 0x146   :  { %s505_s11 = spop %504  ;;  %v452_v25 = vstv %s503_s9 }
 0x147   :  { %s322_s10 = sadd.f32 %s321_s8, %s320_s6  ;;  %v455_v31 = vstv %s505_s11 }
 0x149   :  { %v449_v29 = vstv %s322_s10 }
 0x14a   :  { %v450_v16 = vsel %vm448_vm1, %v449_v29, 0.0 }
 0x14b   :  { %v453_v6 = vsel %vm451_vm11, %v452_v25, %v450_v16 }
 0x14c   :  { %v456_v33 = vsel %vm454_vm12, %v455_v31, %v453_v6 }
 0x14d   :  { %457 = vst [vmem:[#allocation7] sm:$0xff] %v456_v33 }
 0x14e   :  { %566 = shalt.err (!%p563_p6)
}
 0x14f   :  { %s567_s17 = scalar_lea.hbm %s957_s2, 128 }
 0x150   :  { %p568_p7 = scmp.ne.s32.totalorder %s957_s2, %s567_s17  ;;  %p571_p8 = scmp.lt.u32.totalorder %s567_s17, %s957_s2 }
 0x152   :  { %p573_p9 = pnand %p571_p8, %p568_p7 }
 0x154   :  { %576 = shalt.err (!%p573_p9)
}
 0x155   :  { %467 = dma.vmem_to_hbm [thread:$0]  %s465_s13, 128, %s957_s2, [#allocation4]  }
 0x156   :  { %581 = dma.done.wait [#allocation4], 128  }
 0x157   :  { %582 = vsyncadd [#allocation4], 4294967168 }
 0x158   :  { %471 = vsyncpa [#allocation3], 1 }
 0x159   :  { %472 = vsyncpa [#allocation6], 1 }
 0x15a   :  { %473 = vsyncpa [#allocation4], 1 }

</bundles_post_ra>
